<compile_context>
chip_gen: v6e
topology: v6e:2x2x1
jax: 0.10.0
libtpu: 0.0.40
codegen_flags: <defaults>
</compile_context>

<pallas_src>
import jax
import jax.numpy as jnp
from jax import lax
from jax.experimental import pallas as pl
from jax.experimental.pallas import tpu as pltpu


def _round_up(x: int, m: int) -> int:
    return ((x + m - 1) // m) * m


def _hw_config():
    """Per-generation tiling config: (#batch splits, tile byte target, VMEM limit)."""
    kind = ""
    try:
        kind = jax.devices()[0].device_kind.lower()
    except Exception:
        pass
    if "v7" in kind or "7x" in kind:
        # v7x: 2 TensorCores per chip, 64 MiB physical / 32 MiB scoped VMEM per TC.
        return dict(num_splits=2, tile_bytes=4 << 20, vmem_limit=32 << 20)
    if "v6" in kind or "v5" in kind:
        # Single TensorCore, 128 MiB physical VMEM: bigger tiles, no split.
        return dict(num_splits=1, tile_bytes=8 << 20, vmem_limit=64 << 20)
    # Unknown device (incl. interpret mode): conservative defaults.
    return dict(num_splits=1, tile_bytes=4 << 20, vmem_limit=64 << 20)


def _make_triplet_kernel(margin: float, batch: int, tile_b: int,
                         tiles_per_split: int, aligned: bool):
    # All config values below are plain Python scalars -> lowered as literals
    # (no captured jnp constants).
    margin = float(margin)

    def kernel(a_ref, p_ref, n_ref, o_ref):
        c = pl.program_id(0)   # batch split (parallel; both TCs on v7x)
        i = pl.program_id(1)   # tile within the split (reduction axis, last)

        # The output block is the per-split accumulator (same block for all i).
        @pl.when(i == 0)
        def _init():
            o_ref[...] = jnp.zeros_like(o_ref)

        a = a_ref[...]
        # Subtract in the native dtype (bf16 VALUs on v6e/v7x); promote to f32
        # only for square / accumulate.
        dp = (a - p_ref[...]).astype(jnp.float32)
        dn = (a - n_ref[...]).astype(jnp.float32)

        d_pos = jnp.sqrt(jnp.sum(dp * dp, axis=1, keepdims=True))   # (tile_b, 1)
        d_neg = jnp.sqrt(jnp.sum(dn * dn, axis=1, keepdims=True))   # (tile_b, 1)
        hinge = jnp.maximum(d_pos - d_neg + margin, 0.0)            # (tile_b, 1)

        if aligned:
            # B is exactly covered by the grid: no masking needed anywhere.
            o_ref[...] += hinge
        else:
            row0 = (c * tiles_per_split + i) * tile_b
            needs_mask = row0 + tile_b > batch

            @pl.when(jnp.logical_not(needs_mask))
            def _interior():
                o_ref[...] += hinge

            @pl.when(needs_mask)
            def _boundary():
                # Zero out rows past the true batch (stale/garbage data from
                # the ragged / clamped block) BEFORE accumulating.
                rows = row0 + lax.broadcasted_iota(jnp.int32, (tile_b, 1), 0)
                o_ref[...] += jnp.where(rows < batch, hinge, 0.0)

    return kernel


def triplet_loss_pallas(anchor, positive, negative, margin: float = 0.3,
                        max_tile_b=None, num_splits=None):
    assert anchor.shape == positive.shape == negative.shape
    assert anchor.ndim == 2
    B, D = anchor.shape
    elt = jnp.dtype(anchor.dtype).itemsize

    cfg = _hw_config()
    n_splits = cfg["num_splits"] if num_splits is None else int(num_splits)
    # Tiny-input fast path: never split a batch that fits in a couple of tiles
    # (avoids padding 8 rows to 16 and doubling the grid-step overhead).
    if 3 * B * D * elt < (4 << 20):
        n_splits = min(n_splits, 1) if num_splits is None else n_splits

    # --- Tile sizing: ~cfg["tile_bytes"] per input tile; 3 inputs x 2 pipeline
    # buffers stay inside the per-generation scoped-VMEM limit. ---------------
    row_budget = max(8, (cfg["tile_bytes"] // max(1, D * elt)) // 8 * 8)
    if max_tile_b is not None:
        row_budget = min(row_budget, max(8, (int(max_tile_b) // 8) * 8))

    tile_b = min(row_budget, _round_up(pl.cdiv(B, n_splits), 8))
    tiles_per_split = pl.cdiv(B, n_splits * tile_b)
    aligned = (n_splits * tiles_per_split * tile_b == B)

    # Clamp block indices that would land entirely past the array (possible
    # only when the split over-covers a ragged batch); their rows are masked.
    last_block = pl.cdiv(B, tile_b) - 1
    if n_splits * tiles_per_split > last_block + 1:
        def in_index(c, i):
            return (jnp.minimum(c * tiles_per_split + i, last_block), 0)
    else:
        def in_index(c, i):
            return (c * tiles_per_split + i, 0)

    kernel = _make_triplet_kernel(float(margin), B, tile_b, tiles_per_split,
                                  aligned)
    in_spec = pl.BlockSpec((tile_b, D), in_index)

    partial = pl.pallas_call(
        kernel,
        out_shape=jax.ShapeDtypeStruct((n_splits * tile_b, 1), jnp.float32),
        grid=(n_splits, tiles_per_split),
        in_specs=[in_spec, in_spec, in_spec],
        out_specs=pl.BlockSpec((tile_b, 1), lambda c, i: (c, 0)),
        compiler_params=pltpu.CompilerParams(
            dimension_semantics=("parallel", "arbitrary"),
            vmem_limit_bytes=cfg["vmem_limit"],
        ),
    )(anchor, positive, negative)

    # Tiny cross-row reduction + single mean over the true batch size.
    return jnp.sum(partial) / B


def triplet_loss_ref(anchor, positive, negative, margin: float = 0.3):
    # Pure-JAX reference matching the PyTorch semantics (torch.norm, p=2, dim=1,
    # MarginRankingLoss with target=+1).
    d_pos = jnp.sqrt(jnp.sum((anchor - positive) ** 2, axis=1))
    d_neg = jnp.sqrt(jnp.sum((anchor - negative) ** 2, axis=1))
    return jnp.mean(jnp.maximum(d_pos - d_neg + margin, 0.0))


if __name__ == "__main__":
    keys = jax.random.split(jax.random.PRNGKey(0), 6)

    # Case 1: the module's nominal small shape (batch of 8 embeddings, dim 32).
    B, D = 8, 32
    anchor = jax.random.normal(keys[0], (B, D), dtype=jnp.float32)
    positive = jax.random.normal(keys[1], (B, D), dtype=jnp.float32)
    negative = jax.random.normal(keys[2], (B, D), dtype=jnp.float32)

    loss = triplet_loss_pallas(anchor, positive, negative, margin=0.3)
    loss = jax.block_until_ready(loss)
    ref = triplet_loss_ref(anchor, positive, negative, margin=0.3)
    assert jnp.allclose(loss, ref, rtol=1e-5, atol=1e-5), (loss, ref)

    # Case 2: non-aligned batch + forced small tile to exercise the tiled
    # accumulation and the no-pad ragged-boundary masking path.
    B2, D2 = 37, 64
    anchor2 = jax.random.normal(keys[3], (B2, D2), dtype=jnp.float32)
    positive2 = jax.random.normal(keys[4], (B2, D2), dtype=jnp.float32)
    negative2 = jax.random.normal(keys[5], (B2, D2), dtype=jnp.float32)

    loss2 = triplet_loss_pallas(anchor2, positive2, negative2, margin=0.3,
                                max_tile_b=8)
    loss2 = jax.block_until_ready(loss2)
    ref2 = triplet_loss_ref(anchor2, positive2, negative2, margin=0.3)
    assert jnp.allclose(loss2, ref2, rtol=1e-5, atol=1e-5), (loss2, ref2)

    # Case 3: force the v7x-style 2-way split on a ragged batch to exercise the
    # clamped index_map + fully-masked-tile path on any generation.
    loss3 = triplet_loss_pallas(anchor2, positive2, negative2, margin=0.3,
                                max_tile_b=8, num_splits=2)
    loss3 = jax.block_until_ready(loss3)
    assert jnp.allclose(loss3, ref2, rtol=1e-5, atol=1e-5), (loss3, ref2)

    print("KERNEL_OK")
</pallas_src>

<mosaic_0001>
module attributes {stable_mosaic.version = 11 : i64} {
  func.func @kernel(%arg0: i32, %arg1: i32, %arg2: memref<8x32xf32, #tpu.memory_space<vmem>>, %arg3: memref<8x32xf32, #tpu.memory_space<vmem>>, %arg4: memref<8x32xf32, #tpu.memory_space<vmem>>, %arg5: memref<8x1xf32, #tpu.memory_space<vmem>>) attributes {dimension_semantics = [#tpu.dimension_semantics<parallel>, #tpu.dimension_semantics<arbitrary>], iteration_bounds = array<i64: 1, 1>, scalar_prefetch = 0 : i64, scratch_operands = 0 : i64, tpu.core_type = #tpu.core_type<tc>, window_params = [{transform_indices = @transform_0, window_bounds = array<i64: 8, 32>}, {transform_indices = @transform_1, window_bounds = array<i64: 8, 32>}, {transform_indices = @transform_2, window_bounds = array<i64: 8, 32>}, {transform_indices = @transform_3, window_bounds = array<i64: 8, 1>}]} {
    %c0_i32 = arith.constant 0 : i32
    %0 = arith.cmpi eq, %arg1, %c0_i32 : i32
    %1 = arith.extui %0 : i1 to i32
    %c0_i32_0 = arith.constant 0 : i32
    %2 = arith.cmpi ne, %1, %c0_i32_0 : i32
    scf.if %2 {
      %cst_13 = arith.constant 0.000000e+00 : f32
      %24 = vector.broadcast %cst_13 : f32 to vector<8x1xf32>
      %c0_14 = arith.constant 0 : index
      %c0_15 = arith.constant 0 : index
      %25 = vector.load %arg5[%c0_14, %c0_15] : memref<8x1xf32, #tpu.memory_space<vmem>>, vector<8x1xf32>
      tpu.vector_store %arg5[%c0_14, %c0_15], %24 {strides = array<i32>} : memref<8x1xf32, #tpu.memory_space<vmem>>, vector<8x1xf32>,
    } else {
    }
    %c0 = arith.constant 0 : index
    %c0_1 = arith.constant 0 : index
    %3 = vector.load %arg2[%c0, %c0_1] : memref<8x32xf32, #tpu.memory_space<vmem>>, vector<8x32xf32>
    %c0_2 = arith.constant 0 : index
    %c0_3 = arith.constant 0 : index
    %4 = vector.load %arg3[%c0_2, %c0_3] : memref<8x32xf32, #tpu.memory_space<vmem>>, vector<8x32xf32>
    %5 = arith.subf %3, %4 : vector<8x32xf32>
    %c0_4 = arith.constant 0 : index
    %c0_5 = arith.constant 0 : index
    %6 = vector.load %arg4[%c0_4, %c0_5] : memref<8x32xf32, #tpu.memory_space<vmem>>, vector<8x32xf32>
    %7 = arith.subf %3, %6 : vector<8x32xf32>
    %8 = arith.mulf %5, %5 : vector<8x32xf32>
    %cst = arith.constant dense<0.000000e+00> : vector<8xf32>
    %9 = vector.multi_reduction <add>, %8, %cst [1] : vector<8x32xf32> to vector<8xf32>
    %10 = vector.shape_cast %9 : vector<8xf32> to vector<8x1xf32>
    %11 = math.sqrt %10 : vector<8x1xf32>
    %12 = arith.mulf %7, %7 : vector<8x32xf32>
    %cst_6 = arith.constant dense<0.000000e+00> : vector<8xf32>
    %13 = vector.multi_reduction <add>, %12, %cst_6 [1] : vector<8x32xf32> to vector<8xf32>
    %14 = vector.shape_cast %13 : vector<8xf32> to vector<8x1xf32>
    %15 = math.sqrt %14 : vector<8x1xf32>
    %16 = arith.subf %11, %15 : vector<8x1xf32>
    %cst_7 = arith.constant 3.000000e-01 : f32
    %17 = vector.broadcast %cst_7 : f32 to vector<8x1xf32>
    %18 = arith.addf %16, %17 : vector<8x1xf32>
    %cst_8 = arith.constant 0.000000e+00 : f32
    %19 = vector.broadcast %cst_8 : f32 to vector<8x1xf32>
    %20 = arith.maximumf %18, %19 : vector<8x1xf32>
    %c0_9 = arith.constant 0 : index
    %c0_10 = arith.constant 0 : index
    %21 = vector.load %arg5[%c0_9, %c0_10] : memref<8x1xf32, #tpu.memory_space<vmem>>, vector<8x1xf32>
    %22 = arith.addf %21, %20 : vector<8x1xf32>
    %c0_11 = arith.constant 0 : index
    %c0_12 = arith.constant 0 : index
    %23 = vector.load %arg5[%c0_11, %c0_12] : memref<8x1xf32, #tpu.memory_space<vmem>>, vector<8x1xf32>
    tpu.vector_store %arg5[%c0_11, %c0_12], %22 {strides = array<i32>} : memref<8x1xf32, #tpu.memory_space<vmem>>, vector<8x1xf32>,
    return
  }
  func.func @transform_0(%arg0: i32, %arg1: i32) -> (i32, i32) {
    %c1_i32 = arith.constant 1 : i32
    %0 = arith.muli %arg0, %c1_i32 : i32
    %1 = arith.addi %0, %arg1 : i32
    %c0_i32 = arith.constant 0 : i32
    %c0_i32_0 = arith.constant 0 : i32
    return %1, %c0_i32 : i32, i32
  }
  func.func @transform_1(%arg0: i32, %arg1: i32) -> (i32, i32) {
    %c1_i32 = arith.constant 1 : i32
    %0 = arith.muli %arg0, %c1_i32 : i32
    %1 = arith.addi %0, %arg1 : i32
    %c0_i32 = arith.constant 0 : i32
    %c0_i32_0 = arith.constant 0 : i32
    return %1, %c0_i32 : i32, i32
  }
  func.func @transform_2(%arg0: i32, %arg1: i32) -> (i32, i32) {
    %c1_i32 = arith.constant 1 : i32
    %0 = arith.muli %arg0, %c1_i32 : i32
    %1 = arith.addi %0, %arg1 : i32
    %c0_i32 = arith.constant 0 : i32
    %c0_i32_0 = arith.constant 0 : i32
    return %1, %c0_i32 : i32, i32
  }
  func.func @transform_3(%arg0: i32, %arg1: i32) -> (i32, i32) {
    %c0_i32 = arith.constant 0 : i32
    %c0_i32_0 = arith.constant 0 : i32
    return %arg0, %c0_i32 : i32, i32
  }
}

</mosaic_0001>

<bundles_post_ra>
// kernel: tpu_custom_call.1
= control target key start
LH: loop header
LB: loop body
LE: loop exit
PB: predicated region body
PF: predicated region fallthrough
CT: control target
= control target key end

     0   :  { %8 = vsyncpa [#allocation3], 0  ;;  %s224_s0 = inlined_call_operand.hbm [shape: f32[8,32], index: 0, kind: input, shape index: {}]   ;;  %s225_s1 = inlined_call_operand.hbm [shape: f32[8,32], index: 1, kind: input, shape index: {}]   ;;  %s226_s2 = inlined_call_operand.hbm [shape: f32[8,32], index: 2, kind: input, shape index: {}]   ;;  %s227_s3 = inlined_call_operand.vmem [shape: f32[8,1], index: 3, kind: output, shape index: {}]  }
   0x1   :  { %9 = vsyncpa [#allocation5], 0  ;;  %s180_s12 = smov [#allocation4]   ;;  %s181_s14 = smov [#allocation2]  }
   0x2   :  { %s32_s13 = sshll.u32 %s180_s12, 4  ;;  %s19_s15 = sshll.u32 %s181_s14, 4  ;;  %s33_s13 = int_to_ptr.vmem [resolvable:$true] %s32_s13  ;;  %s20_s15 = int_to_ptr.vmem [resolvable:$true] %s19_s15 }
   0x3   :  { %s124_s16 = scalar_lea.vmem %s33_s13, 128  ;;  %p129_p1 = scmp.lt.s32.totalorder %s33_s13, %s33_s13 }
   0x4   :  { %p125_p0 = scmp.ne.s32.totalorder %s33_s13, %s124_s16  ;;  %p130_p2 = scmp.lt.s32.totalorder %s124_s16, %s124_s16 }
   0x6   :  { %p131_p3 = por %p130_p2, %p129_p1 }
   0x8   :  { %p132_p4 = pnand %p131_p3, %p125_p0 }
   0xa   :  { %135 = shalt.err (!%p132_p4)
}
   0xb   :  { %35 = dma.hbm_to_vmem [thread:$0]  %s225_s1, 128, %s33_s13, [#allocation5]  }
   0xc   :  { %s144_s19 = scalar_lea.vmem %s20_s15, 128  ;;  %p149_p6 = scmp.lt.s32.totalorder %s20_s15, %s20_s15 }
   0xd   :  { %p145_p5 = scmp.ne.s32.totalorder %s20_s15, %s144_s19  ;;  %p150_p7 = scmp.lt.s32.totalorder %s144_s19, %s144_s19 }
   0xf   :  { %p151_p8 = por %p150_p7, %p149_p6 }
  0x11   :  { %p152_p9 = pnand %p151_p8, %p145_p5 }
  0x13   :  { %155 = shalt.err (!%p152_p9)
}
  0x14   :  { %22 = dma.hbm_to_vmem [thread:$0]  %s224_s0, 128, %s20_s15, [#allocation3]  }
  0x15   :  { %s182_s22 = smov [#allocation6]  }
  0x16   :  { %s45_s23 = sshll.u32 %s182_s22, 4  ;;  %s46_s23 = int_to_ptr.vmem [resolvable:$true] %s45_s23 }
  0x17   :  { %s164_s24 = scalar_lea.vmem %s46_s23, 128  ;;  %p169_p11 = scmp.lt.s32.totalorder %s46_s23, %s46_s23 }
  0x18   :  { %p165_p10 = scmp.ne.s32.totalorder %s46_s23, %s164_s24  ;;  %p170_p12 = scmp.lt.s32.totalorder %s164_s24, %s164_s24 }
  0x1a   :  { %p171_p13 = por %p170_p12, %p169_p11 }
  0x1c   :  { %p172_p0 = pnand %p171_p13, %p165_p10 }
  0x1e   :  { %175 = shalt.err (!%p172_p0)
}
  0x1f   :  { %48 = dma.hbm_to_vmem [thread:$0]  %s226_s2, 128, %s46_s23, [#allocation5]  }
  0x20   :  { %176 = dma.done.wait [#allocation3], 128  }
  0x21   :  { %177 = vsyncadd [#allocation3], 4294967168 }
  0x22   :  { %178 = dma.done.wait [#allocation5], 256  }
  0x23   :  { %179 = vsyncadd [#allocation5], 4294967040  ;;  %vm65_vm0 = vcmask 7168   ;;  %v183_v0 = vmov 0.0   ;;  %v67_v1 = vld [vmem:[#allocation2] sm:$0xff]  ;;  %v68_v2 = vld [vmem:[#allocation4] sm:$0xff] }
  0x24   :  { %66 = vst.msk [vmem:[%s227_s3] sm:$0xff] %vm65_vm0, %v183_v0  ;;  %v70_v3 = vld [vmem:[#allocation6] sm:$0xff]  ;;  %v69_v4 = vsub.f32 %v67_v1, %v68_v2  ;;  %vm73_vm1 = vcmask 261120  }
  0x25   :  { %v71_v5 = vsub.f32 %v67_v1, %v70_v3 }
  0x26   :  { %v72_v6 = vmul.f32 %v69_v4, %v69_v4 }
  0x27   :  { %v84_v7 = vmul.f32 %v71_v5, %v71_v5 }
  0x28   :  { %v74_v8 = vsel %vm73_vm1, %v72_v6, 0.0 }
  0x29   :  { %75 = vadd.xlane.f32.xlu0 %v74_v8  ;;  %v85_v9 = vsel %vm73_vm1, %v84_v7, 0.0 }
  0x2b   :  { %v98_v24 = vld [vmem:[%s227_s3] sm:$0xff] }
  0x2d   :  { %86 = vadd.xlane.f32.xlu0 %v85_v9 }
  0xb2   :  { %v76_v10 = vpop.xlane.xlu0 %75 }
  0xb3   :  { %112 = vrsqrt.f32 %v76_v10  ;;  %vm79_vm2 = vcmp.eq.f32.partialorder %v76_v10, inf  ;;  %v82_v17 = vand.u32 2147483648, %v76_v10  ;;  %vm81_vm4 = vcmp.eq.f32.partialorder %v76_v10, 0.0 }
  0xb6   :  { %v87_v11 = vpop.xlane.xlu0 %86 }
  0xb7   :  { %114 = vrsqrt.f32 %v87_v11  ;;  %vm90_vm3 = vcmp.eq.f32.partialorder %v87_v11, inf  ;;  %v93_v18 = vand.u32 2147483648, %v87_v11  ;;  %vm92_vm5 = vcmp.eq.f32.partialorder %v87_v11, 0.0 }
  0xc0   :  { %v113_v12 = vpop.eup %112 }
  0xc1   :  { %v78_v13 = vmul.f32 %v113_v12, %v76_v10 }
  0xc3   :  { %v80_v15 = vsel %vm79_vm2, %v76_v10, %v78_v13 }
  0xc4   :  { %v115_v14 = vpop.eup %114  ;;  %v83_v20 = vsel %vm81_vm4, %v82_v17, %v80_v15 }
  0xc5   :  { %v89_v16 = vmul.f32 %v115_v14, %v87_v11 }
  0xc7   :  { %v91_v19 = vsel %vm90_vm3, %v87_v11, %v89_v16 }
  0xc8   :  { %v94_v21 = vsel %vm92_vm5, %v93_v18, %v91_v19 }
  0xc9   :  { %v95_v22 = vsub.f32 %v83_v20, %v94_v21 }
  0xcb   :  { %v96_v23 = vadd.f32 0.3, %v95_v22 }
  0xcd   :  { %v97_v25 = vmax.f32 %v96_v23, 0.0 }
  0xcf   :  { %v99_v26 = vadd.f32 %v98_v24, %v97_v25 }
  0xd1   :  { %101 = vst.msk [vmem:[%s227_s3] sm:$0xff] %vm65_vm0, %v99_v26 }
  0xd2   :  { %106 = vsyncpa [#allocation3], 1 }
  0xd3   :  { %107 = vsyncpa [#allocation5], 1 }

</bundles_post_ra>
